<compile_context>
chip_gen: v7x
topology: tpu7x:2x2x1
jax: 0.10.0
libtpu: 0.0.40
codegen_flags: <defaults>
</compile_context>

<pallas_src>
import jax
import jax.numpy as jnp
from jax.experimental import pallas as pl
from jax.experimental.pallas import tpu as pltpu

_FAST_PATH_BYTES = 256 * 1024          # below this, skip the kernel launch
_LANE_CHOICES = (512, 256, 128)        # lane-dense last dim candidates


def _hswish_jnp(x):
    """Plain jnp hard-swish (fast path + reference)."""
    dt = x.dtype
    return x * jnp.clip(x + jnp.asarray(3.0, dt),
                        jnp.asarray(0.0, dt),
                        jnp.asarray(6.0, dt)) * jnp.asarray(1.0 / 6.0, dt)


def _hswish_kernel(x_ref, o_ref):
    x = x_ref[...]
    three = jnp.asarray(3.0, x.dtype)
    six = jnp.asarray(6.0, x.dtype)
    zero = jnp.asarray(0.0, x.dtype)
    sixth = jnp.asarray(1.0 / 6.0, x.dtype)
    # x * relu6(x + 3) * (1/6)  -- multiply by reciprocal instead of divide.
    o_ref[...] = x * jnp.clip(x + three, zero, six) * sixth


def _block_bytes_target() -> int:
    """Per-generation block-size budget (per buffer, before double-buffering)."""
    try:
        kind = jax.devices()[0].device_kind.lower()
    except Exception:
        kind = ""
    if "v6" in kind or "v7" in kind:
        return 4 << 20   # 4 MiB blocks: 16 MiB double-buffered fits 32 MiB scoped VMEM
    return 2 << 20       # v5e (16 MiB scoped default) / unknown: stay conservative


def hswish(x: jax.Array) -> jax.Array:
    """Hard-swish, elementwise. Any shape; returns same shape/dtype."""
    orig_shape = x.shape
    n = int(x.size)
    if n == 0:
        return x

    itemsize = jnp.dtype(x.dtype).itemsize

    # --- small-size fast path: let XLA fuse it, no custom-call dispatch ------
    if n * itemsize < _FAST_PATH_BYTES:
        return _hswish_jnp(x)

    # --- choose a lane width that gives a zero-copy reshape when possible ---
    lanes = None
    for cand in _LANE_CHOICES:
        if n % cand == 0:
            lanes = cand
            break

    flat = x.reshape(-1)
    if lanes is not None:
        rows = n // lanes
        needs_slice = False
    else:
        # Rare fallback (element count not a multiple of 128): pad only to the
        # lane boundary. hswish(0) == 0, padded elements are sliced off below.
        lanes = 128
        rows = pl.cdiv(n, lanes)
        flat = jnp.pad(flat, (0, rows * lanes - n))
        needs_slice = True
    x2d = flat.reshape(rows, lanes)

    # --- block sizing: ~2-4 MiB per block, >= 4 grid steps when rows allow ---
    target_bytes = _block_bytes_target()
    max_block_rows = max(8, (target_bytes // (lanes * itemsize)) // 8 * 8)
    desired_rows = max(8, ((pl.cdiv(rows, 4) + 7) // 8) * 8)
    block_rows = min(max_block_rows, desired_rows)
    grid = (pl.cdiv(rows, block_rows),)

    cost = pl.CostEstimate(
        flops=5 * n,
        transcendentals=0,
        bytes_accessed=2 * n * itemsize,
    )

    out = pl.pallas_call(
        _hswish_kernel,
        out_shape=jax.ShapeDtypeStruct((rows, lanes), x.dtype),
        grid_spec=pl.GridSpec(
            grid=grid,
            in_specs=[pl.BlockSpec((block_rows, lanes), lambda i: (i, 0))],
            out_specs=pl.BlockSpec((block_rows, lanes), lambda i: (i, 0)),
        ),
        compiler_params=pltpu.CompilerParams(
            dimension_semantics=("parallel",),
        ),
        cost_estimate=cost,
    )(x2d)

    if needs_slice:
        return out.reshape(-1)[:n].reshape(orig_shape)
    return out.reshape(orig_shape)


if __name__ == "__main__":
    key = jax.random.PRNGKey(0)
    k1, k2, k3 = jax.random.split(key, 3)

    # 1) Small MobileNetV3-style activation -> fused jnp fast path.
    x_small = jax.random.normal(k1, (2, 4, 16, 16), dtype=jnp.float32) * 4.0
    y_small = jax.block_until_ready(hswish(x_small))
    assert y_small.shape == x_small.shape and y_small.dtype == x_small.dtype
    assert jnp.max(jnp.abs(y_small - _hswish_jnp(x_small))) < 1e-6

    # 2) Larger activation, size divisible by 512 -> zero-copy Pallas path.
    x_big = jax.random.normal(k2, (2, 64, 64, 64), dtype=jnp.float32) * 4.0
    y_big = jax.block_until_ready(hswish(x_big))
    assert y_big.shape == x_big.shape and y_big.dtype == x_big.dtype
    assert jnp.max(jnp.abs(y_big - _hswish_jnp(x_big))) < 1e-5

    # 3) Size not divisible by 128 -> exercises the rare pad/slice fallback.
    x_odd = jax.random.normal(k3, (1, 21, 99, 99), dtype=jnp.float32) * 4.0
    y_odd = jax.block_until_ready(hswish(x_odd))
    assert y_odd.shape == x_odd.shape
    assert jnp.max(jnp.abs(y_odd - _hswish_jnp(x_odd))) < 1e-5

    print("KERNEL_OK")
</pallas_src>

<mosaic_0001>
module attributes {stable_mosaic.version = 11 : i64} {
  func.func @_hswish_kernel(%arg0: i32, %arg1: memref<256x512xf32, #tpu.memory_space<vmem>>, %arg2: memref<256x512xf32, #tpu.memory_space<vmem>>) attributes {dimension_semantics = [#tpu.dimension_semantics<parallel>], iteration_bounds = array<i64: 4>, scalar_prefetch = 0 : i64, scratch_operands = 0 : i64, tpu.core_type = #tpu.core_type<tc>, window_params = [{transform_indices = @transform_0, window_bounds = array<i64: 256, 512>}, {transform_indices = @transform_1, window_bounds = array<i64: 256, 512>}]} {
    %c0 = arith.constant 0 : index
    %c0_0 = arith.constant 0 : index
    %0 = vector.load %arg1[%c0, %c0_0] : memref<256x512xf32, #tpu.memory_space<vmem>>, vector<256x512xf32>
    %cst = arith.constant 3.000000e+00 : f32
    %1 = vector.broadcast %cst : f32 to vector<256x512xf32>
    %2 = arith.addf %0, %1 : vector<256x512xf32>
    %cst_1 = arith.constant 0.000000e+00 : f32
    %cst_2 = arith.constant 6.000000e+00 : f32
    %3 = vector.broadcast %cst_1 : f32 to vector<256x512xf32>
    %4 = arith.maximumf %3, %2 : vector<256x512xf32>
    %5 = vector.broadcast %cst_2 : f32 to vector<256x512xf32>
    %6 = arith.minimumf %5, %4 : vector<256x512xf32>
    %7 = arith.mulf %0, %6 : vector<256x512xf32>
    %cst_3 = arith.constant 0.166666672 : f32
    %8 = vector.broadcast %cst_3 : f32 to vector<256x512xf32>
    %9 = arith.mulf %7, %8 : vector<256x512xf32>
    %c0_4 = arith.constant 0 : index
    %c0_5 = arith.constant 0 : index
    %10 = vector.load %arg2[%c0_4, %c0_5] : memref<256x512xf32, #tpu.memory_space<vmem>>, vector<256x512xf32>
    tpu.vector_store %arg2[%c0_4, %c0_5], %9 {strides = array<i32>} : memref<256x512xf32, #tpu.memory_space<vmem>>, vector<256x512xf32>,
    return
  }
  func.func @transform_0(%arg0: i32) -> (i32, i32) {
    %c0_i32 = arith.constant 0 : i32
    %c0_i32_0 = arith.constant 0 : i32
    return %arg0, %c0_i32 : i32, i32
  }
  func.func @transform_1(%arg0: i32) -> (i32, i32) {
    %c0_i32 = arith.constant 0 : i32
    %c0_i32_0 = arith.constant 0 : i32
    return %arg0, %c0_i32 : i32, i32
  }
}

</mosaic_0001>

<bundles_post_ra>
// kernel: tpu_custom_call.1
= control target key start
LH: loop header
LB: loop body
LE: loop exit
PB: predicated region body
PF: predicated region fallthrough
CT: control target
= control target key end

     0   :  { %6 = vsyncpa [#allocation3], 0  ;;  %s1731_s0 = inlined_call_operand.hbm [shape: f32[1024,512], index: 0, kind: input, shape index: {}]   ;;  %s1732_s1 = inlined_call_operand.hbm [shape: f32[1024,512], index: 1, kind: output, shape index: {}]  }
   0x1   :  { %8 = vsyncpa [#allocation3 + $0x1], 0 }
   0x2   :  { %9 = vsyncpa [#allocation4], 0 }
   0x3   :  { %11 = vsyncpa [#allocation4 + $0x1], 0  ;;  %s1306_s6 = smov 0   ;;  %s1308_s7 = smov 0  }
   0x4   :  { %s1310_s8 = smov 0   ;;  %s1312_s9 = smov 0  }
   0x5 LB: > { %s1327_s10 = sadd.s32 4294967295, %s1288_s9   ;;  %s1122_s11 = sadd.s32 4294967294, %s1288_s9   ;;  %s1288_s9 = sphi %s1312_s9, %s1744_s9   ;;  %s1284_s8 = sphi %s1310_s8, %s1743_s8   ;;  %s1280_s7 = sphi %s1308_s7, %s1742_s7   ;;  %s1276_s6 = sphi %s1306_s6, %s1741_s6  }
   0x6   : > { %s1331_s12 = sadd.s32 1, %s1288_s9   ;;  %s24_s13 = sadd.s32 1, %s1284_s8 }
   0x7   : > { %s21_s14 = ssub.s32 %s1288_s9, %s1331_s12  ;;  %p31_p0 = scmp.ne.s32.totalorder %s1284_s8, %s1280_s7 }
   0x8   : > { %p22_p1 = scmp.eq.s32.totalorder %s21_s14, 0  ;;  %p32_p2 = scmp.eq.s32.totalorder %s1288_s9, 0 }
   0x9   : > { %p37_p3 = scmp.ne.s32.totalorder %s1280_s7, %s1276_s6  ;;  %p38_p4 = scmp.eq.s32.totalorder %s1327_s10, 0 }
   0xa   : > { %s1343_s15 = scalar_select %p22_p1, %s1284_s8, %s24_s13  }
   0xb   : > { %p1345_p5 = por %p32_p2, %p31_p0  ;;  %p1349_p6 = por %p38_p4, %p37_p3 }
   0xc   : > { %p61_p7 = scmp.eq.s32.totalorder %s1327_s10, 3  ;;  %p67_p8 = scmp.eq.s32.totalorder %s1122_s11, 3 }
   0xd   : > { %p1154_p9 = scmp.lt.s32.totalorder %s1288_s9, 4  ;;  %s87_s20 = sand.u32 1, %s1284_s8  }
   0xe   : > { %p1355_p10 = por %p61_p7, %p31_p0  ;;  %p1359_p11 = por %p67_p8, %p37_p3 }
   0xf   : > { %s1139_s21 = sshll.u32 %s1288_s9, 14  ;;  %s1125_s22 = sshll.u32 %s87_s20, 10 }
  0x10   : > { %s1736_s18 = scalar_select %p1355_p10, 1, 0 }
  0x11   : > { %s1737_s19 = scalar_select %p1359_p11, 1, 0 }
  0x12   : > { %s1368_s25 = scalar_lea.hbm %s1731_s0, %s1139_s21  ;;  %s91_s26 = scalar_lea.vmem [#allocation2], %s1125_s22 }
  0x13   : > { %s99_s27 = sshll.u32 %s91_s26, 4  ;;  %p1372_p12 = pnand %p1154_p9, %p1345_p5  ;;  %s1376_s27 = int_to_ptr.vmem [resolvable:$true] %s99_s27 }
  0x14   : > { %s1378_s29 = scalar_lea.sflag [#allocation3], %s87_s20  ;;  %s1192_s30 = scalar_lea.hbm %s1368_s25, 16384 }
  0x15   : > { %p1193_p13 = scmp.ne.s32.totalorder %s1368_s25, %s1192_s30  ;;  %p1194_p0 = pneg %p1372_p12 }
  0x16   : > { %s1197_s4 = scalar_lea.hbm %s1731_s0, 65536  ;;  %p1198_p3 = scmp.lt.u32.totalorder %s1368_s25, %s1731_s0 }
  0x17   : > { %p1195_p1 = pnand %p1194_p0, %p1193_p13  ;;  %p1199_p4 = scmp.lt.u32.totalorder %s1197_s4, %s1192_s30 }
  0x18   : > { %p1201_p7 = scmp.lt.u32.totalorder %s1192_s30, %s1368_s25 }
  0x19   : > { %p1196_p2 = pneg %p1195_p1  ;;  %p1200_p5 = por %p1199_p4, %p1198_p3 }
  0x1b   : > { %p1202_p8 = por %p1201_p7, %p1200_p5 }
  0x1d   : > { %p1203_p9 = pnand %p1202_p8, %p1196_p2 }
  0x1f   : > { %1206 = shalt.err (!%p1203_p9)
}
  0x20   : > { %s1207_s13 = scalar_lea.vmem %s1376_s27, 16384  ;;  %s1290_s14 = smov [#allocation2]  }
  0x21   : > { %p1208_p13 = scmp.ne.s32.totalorder %s1376_s27, %s1207_s13  ;;  %s1212_s16 = sshll.u32 %s1290_s14, 4  ;;  %s1213_s16 = int_to_ptr.vmem [resolvable:$false] %s1212_s16 }
  0x22   : > { %s1214_s20 = scalar_lea.vmem %s1213_s16, 32768  ;;  %p1215_p10 = scmp.lt.s32.totalorder %s1376_s27, %s1213_s16 }
  0x23   : > { %p1210_p1 = pnand %p1208_p13, %p1194_p0  ;;  %p1216_p3 = scmp.lt.s32.totalorder %s1214_s20, %s1207_s13 }
  0x25   : > { %p1211_p11 = pneg %p1210_p1  ;;  %p1217_p4 = por %p1216_p3, %p1215_p10 }
  0x27   : > { %p1218_p5 = pnand %p1217_p4, %p1211_p11 }
  0x29   : > { %1221 = shalt.err (!%p1218_p5)
}
  0x2a   : > { %s1291_s21 = smov 512   ;;  %s1292_s22 = smov 32  }
  0x2b   : > { %1149 = dma.hbm_to_vmem [thread:$0]  (!%p1372_p12), %s1368_s25, 16384, %s1376_s27, %s1378_s29, %s1291_s21, %s1291_s21, %s1292_s22  }
  0x2c   : > { %p1129_p0 = scmp.ge.s32.totalorder %s1288_s9, 1  ;;  %p107_p2 = scmp.lt.s32.totalorder %s1288_s9, 5 }
  0x2e   : > { %p108_p7 = pnand %p1129_p0, %p107_p2 }
  0x2f   : > { %s1409_s23 = sand.u32 (!%p108_p7), 1, %s1280_s7  }
  0x30   : > { %111 = sbr.rel (%p108_p7) target bundleno = 245 (0xf5), region = 24  ;;  %s1130_s24 = sshll.u32 (!%p108_p7), %s1409_s23, 10 }
  0x31   : > { %s114_s26 = scalar_lea.sflag (!%p108_p7), [#allocation3], %s1409_s23  ;;  %s1415_s30 = scalar_lea.vmem (!%p108_p7), [#allocation2], %s1130_s24 }
  0x37   : > { %1267 = dma.done.wait (%p1349_p6), %s114_s26, 16384  }
  0x38   : > { %1269 = vsyncadd (%p1349_p6), %s114_s26, 4294950912  ;;  %v138_v0 = vld [vmem:[%s1415_s30] sm:$0xff]  ;;  %v139_v1 = vld [vmem:[%s1415_s30 + $0x8] sm:$0xff]  ;;  %s1438_s17 = scalar_lea.vmem [#allocation5], %s1130_s24  ;;  %s1141_s25 = sshll.u32 %s1327_s10, 14 }
  0x39   : > { %v140_v2 = vld [vmem:[%s1415_s30 + $0x10] sm:$0xff]  ;;  %v266_v3 = vadd.f32 3.0, %v138_v0  ;;  %v267_v4 = vadd.f32 3.0, %v139_v1  ;;  %v141_v6 = vld [vmem:[%s1415_s30 + $0x18] sm:$0xff]  ;;  %v142_v7 = vld [vmem:[%s1415_s30 + $0x20] sm:$0xff]  ;;  %s1049_s27 = sshll.u32 %s1438_s17, 4  ;;  %s1681_s29 = scalar_lea.hbm %s1732_s1, %s1141_s25  ;;  %s1683_s27 = int_to_ptr.vmem [resolvable:$true] %s1049_s27 }
  0x3a   : > { %v268_v5 = vadd.f32 3.0, %v140_v2  ;;  %v143_v8 = vld [vmem:[%s1415_s30 + $0x28] sm:$0xff]  ;;  %v269_v9 = vadd.f32 3.0, %v141_v6  ;;  %v270_v10 = vadd.f32 3.0, %v142_v7  ;;  %v144_v12 = vld [vmem:[%s1415_s30 + $0x30] sm:$0xff]  ;;  %v145_v13 = vld [vmem:[%s1415_s30 + $0x38] sm:$0xff] }
  0x3b   : > { %v271_v11 = vadd.f32 3.0, %v143_v8  ;;  %v394_v14 = vmax.f32 %v266_v3, 0.0  ;;  %v395_v15 = vmax.f32 %v267_v4, 0.0  ;;  %v272_v17 = vadd.f32 3.0, %v144_v12  ;;  %v146_v30 = vld [vmem:[%s1415_s30 + $0x40] sm:$0xff]  ;;  %v147_v35 = vld [vmem:[%s1415_s30 + $0x48] sm:$0xff] }
  0x3c   : > { %v396_v16 = vmax.f32 %v268_v5, 0.0  ;;  %v397_v18 = vmax.f32 %v269_v9, 0.0  ;;  %v398_v19 = vmax.f32 %v270_v10, 0.0  ;;  %v273_v21 = vadd.f32 3.0, %v145_v13  ;;  %v148_v36 = vld [vmem:[%s1415_s30 + $0x50] sm:$0xff]  ;;  %v149_v37 = vld [vmem:[%s1415_s30 + $0x58] sm:$0xff] }
  0x3d   : > { %v399_v20 = vmax.f32 %v271_v11, 0.0  ;;  %v522_v22 = vmin.f32 %v394_v14, 6.0  ;;  %v523_v23 = vmin.f32 %v395_v15, 6.0  ;;  %v400_v25 = vmax.f32 %v272_v17, 0.0  ;;  %v150_v42 = vld [vmem:[%s1415_s30 + $0x60] sm:$0xff]  ;;  %v151_v43 = vld [vmem:[%s1415_s30 + $0x68] sm:$0xff] }
  0x3e   : > { %v524_v24 = vmin.f32 %v396_v16, 6.0  ;;  %v525_v26 = vmin.f32 %v397_v18, 6.0  ;;  %v526_v27 = vmin.f32 %v398_v19, 6.0  ;;  %v401_v29 = vmax.f32 %v273_v21, 0.0  ;;  %v152_v44 = vld [vmem:[%s1415_s30 + $0x70] sm:$0xff]  ;;  %v153_v57 = vld [vmem:[%s1415_s30 + $0x78] sm:$0xff] }
  0x3f   : > { %v527_v28 = vmin.f32 %v399_v20, 6.0  ;;  %v650_v31 = vmul.f32 %v522_v22, %v138_v0  ;;  %v651_v32 = vmul.f32 %v523_v23, %v139_v1  ;;  %v528_v34 = vmin.f32 %v400_v25, 6.0  ;;  %v154_v14 = vld [vmem:[%s1415_s30 + $0x80] sm:$0xff]  ;;  %v155_v19 = vld [vmem:[%s1415_s30 + $0x88] sm:$0xff]  ;;  %v156_v20 = vld [vmem:[%s1415_s30 + $0x90] sm:$0xff]  ;;  %s1035_s2 = scalar_lea.sflag [#allocation4], %s1409_s23 }
  0x40   : > { %v652_v33 = vmul.f32 %v524_v24, %v140_v2  ;;  %v653_v38 = vmul.f32 %v525_v26, %v141_v6  ;;  %v654_v39 = vmul.f32 %v526_v27, %v142_v7  ;;  %v529_v41 = vmin.f32 %v401_v29, 6.0  ;;  %v157_v21 = vld [vmem:[%s1415_s30 + $0x98] sm:$0xff]  ;;  %v158_v26 = vld [vmem:[%s1415_s30 + $0xa0] sm:$0xff]  ;;  %v159_v27 = vld [vmem:[%s1415_s30 + $0xa8] sm:$0xff]  ;;  %s1222_s3 = scalar_lea.vmem %s1683_s27, 16384  ;;  %p1739_p10 = scmp.ne.s32.totalorder %s1736_s18, 0 }
  0x41   : > { %v655_v40 = vmul.f32 %v527_v28, %v143_v8  ;;  %v778_v45 = vmul.f32 0.16666667, %v650_v31  ;;  %v779_v46 = vmul.f32 0.16666667, %v651_v32  ;;  %v656_v48 = vmul.f32 %v528_v34, %v144_v12  ;;  %v160_v28 = vld [vmem:[%s1415_s30 + $0xb0] sm:$0xff]  ;;  %p1223_p6 = scmp.ne.s32.totalorder %s1683_s27, %s1222_s3  ;;  %s1293_s4 = smov [#allocation5]  }
  0x42   : > { %v780_v47 = vmul.f32 0.16666667, %v652_v33  ;;  %v781_v49 = vmul.f32 0.16666667, %v653_v38  ;;  %v782_v50 = vmul.f32 0.16666667, %v654_v39  ;;  %v657_v52 = vmul.f32 %v529_v41, %v145_v13 }
  0x43   : > { %v783_v51 = vmul.f32 0.16666667, %v655_v40  ;;  %906 = vst [vmem:[%s1438_s17] sm:$0xff] %v778_v45  ;;  %907 = vst [vmem:[%s1438_s17 + $0x8] sm:$0xff] %v779_v46  ;;  %v784_v53 = vmul.f32 0.16666667, %v656_v48  ;;  %v274_v54 = vadd.f32 3.0, %v146_v30  ;;  %p1224_p11 = pnand %p1223_p6, %p1739_p10 }
  0x44   : > { %908 = vst [vmem:[%s1438_s17 + $0x10] sm:$0xff] %v780_v47  ;;  %v275_v55 = vadd.f32 3.0, %v147_v35  ;;  %v276_v56 = vadd.f32 3.0, %v148_v36  ;;  %909 = vst [vmem:[%s1438_s17 + $0x18] sm:$0xff] %v781_v49  ;;  %v785_v58 = vmul.f32 0.16666667, %v657_v52 }
  0x45   : > { %910 = vst [vmem:[%s1438_s17 + $0x20] sm:$0xff] %v782_v50  ;;  %911 = vst [vmem:[%s1438_s17 + $0x28] sm:$0xff] %v783_v51  ;;  %v277_v59 = vadd.f32 3.0, %v149_v37  ;;  %v278_v60 = vadd.f32 3.0, %v150_v42  ;;  %v279_v61 = vadd.f32 3.0, %v151_v43  ;;  %v402_v62 = vmax.f32 %v274_v54, 0.0  ;;  %p1225_p12 = pneg %p1224_p11 }
  0x46   : > { %912 = vst [vmem:[%s1438_s17 + $0x30] sm:$0xff] %v784_v53  ;;  %v403_v63 = vmax.f32 %v275_v55, 0.0  ;;  %v404_v0 = vmax.f32 %v276_v56, 0.0  ;;  %v280_v1 = vadd.f32 3.0, %v152_v44  ;;  %913 = vst [vmem:[%s1438_s17 + $0x38] sm:$0xff] %v785_v58  ;;  %v281_v5 = vadd.f32 3.0, %v153_v57 }
  0x47   : > { %v405_v2 = vmax.f32 %v277_v59, 0.0  ;;  %v406_v3 = vmax.f32 %v278_v60, 0.0  ;;  %v407_v4 = vmax.f32 %v279_v61, 0.0  ;;  %v530_v6 = vmin.f32 %v402_v62, 6.0  ;;  %v161_v41 = vld [vmem:[%s1415_s30 + $0xb8] sm:$0xff]  ;;  %v162_v62 = vld [vmem:[%s1415_s30 + $0xc0] sm:$0xff] }
  0x48   : > { %v531_v7 = vmin.f32 %v403_v63, 6.0  ;;  %v532_v8 = vmin.f32 %v404_v0, 6.0  ;;  %v408_v9 = vmax.f32 %v280_v1, 0.0  ;;  %v409_v13 = vmax.f32 %v281_v5, 0.0  ;;  %v165_v5 = vld [vmem:[%s1415_s30 + $0xd8] sm:$0xff]  ;;  %s1226_s5 = sshll.u32 %s1293_s4, 4  ;;  %s1227_s5 = int_to_ptr.vmem [resolvable:$false] %s1226_s5 }
  0x49   : > { %v533_v10 = vmin.f32 %v405_v2, 6.0  ;;  %v534_v11 = vmin.f32 %v406_v3, 6.0  ;;  %v535_v12 = vmin.f32 %v407_v4, 6.0  ;;  %v658_v15 = vmul.f32 %v530_v6, %v146_v30  ;;  %v163_v3 = vld [vmem:[%s1415_s30 + $0xc8] sm:$0xff]  ;;  %v164_v4 = vld [vmem:[%s1415_s30 + $0xd0] sm:$0xff]  ;;  %s1228_s11 = scalar_lea.vmem %s1227_s5, 32768  ;;  %p1229_p8 = scmp.lt.s32.totalorder %s1683_s27, %s1227_s5 }
  0x4a   : > { %v659_v16 = vmul.f32 %v531_v7, %v147_v35  ;;  %v660_v17 = vmul.f32 %v532_v8, %v148_v36  ;;  %v536_v18 = vmin.f32 %v408_v9, 6.0  ;;  %v537_v25 = vmin.f32 %v409_v13, 6.0  ;;  %p1230_p9 = scmp.lt.s32.totalorder %s1228_s11, %s1222_s3 }
  0x4b   : > { %v661_v22 = vmul.f32 %v533_v10, %v149_v37  ;;  %v662_v23 = vmul.f32 %v534_v11, %v150_v42  ;;  %v663_v24 = vmul.f32 %v535_v12, %v151_v43  ;;  %v786_v29 = vmul.f32 0.16666667, %v658_v15  ;;  %v166_v10 = vld [vmem:[%s1415_s30 + $0xe0] sm:$0xff]  ;;  %v167_v11 = vld [vmem:[%s1415_s30 + $0xe8] sm:$0xff]  ;;  %v168_v12 = vld [vmem:[%s1415_s30 + $0xf0] sm:$0xff] }
  0x4c   : > { %v787_v30 = vmul.f32 0.16666667, %v659_v16  ;;  %v788_v31 = vmul.f32 0.16666667, %v660_v17  ;;  %v664_v32 = vmul.f32 %v536_v18, %v152_v44  ;;  %v665_v36 = vmul.f32 %v537_v25, %v153_v57  ;;  %v169_v25 = vld [vmem:[%s1415_s30 + $0xf8] sm:$0xff]  ;;  %p1231_p13 = por %p1230_p9, %p1229_p8 }
  0x4d   : > { %v789_v33 = vmul.f32 0.16666667, %v661_v22  ;;  %v790_v34 = vmul.f32 0.16666667, %v662_v23  ;;  %v791_v35 = vmul.f32 0.16666667, %v663_v24 }
  0x4e   : > { %914 = vst [vmem:[%s1438_s17 + $0x40] sm:$0xff] %v786_v29  ;;  %915 = vst [vmem:[%s1438_s17 + $0x48] sm:$0xff] %v787_v30  ;;  %v792_v37 = vmul.f32 0.16666667, %v664_v32  ;;  %v282_v38 = vadd.f32 3.0, %v154_v14  ;;  %v283_v39 = vadd.f32 3.0, %v155_v19  ;;  %p1232_p1 = pnand %p1231_p13, %p1225_p12 }
  0x4f   : > { %916 = vst [vmem:[%s1438_s17 + $0x50] sm:$0xff] %v788_v31  ;;  %v284_v40 = vadd.f32 3.0, %v156_v20  ;;  %917 = vst [vmem:[%s1438_s17 + $0x58] sm:$0xff] %v789_v33  ;;  %v793_v42 = vmul.f32 0.16666667, %v665_v36  ;;  %v285_v43 = vadd.f32 3.0, %v157_v21 }
  0x50   : > { %918 = vst [vmem:[%s1438_s17 + $0x60] sm:$0xff] %v790_v34  ;;  %919 = vst [vmem:[%s1438_s17 + $0x68] sm:$0xff] %v791_v35  ;;  %v286_v44 = vadd.f32 3.0, %v158_v26  ;;  %v287_v45 = vadd.f32 3.0, %v159_v27  ;;  %v410_v46 = vmax.f32 %v282_v38, 0.0  ;;  %v411_v47 = vmax.f32 %v283_v39, 0.0 }
  0x51   : > { %920 = vst [vmem:[%s1438_s17 + $0x70] sm:$0xff] %v792_v37  ;;  %v412_v48 = vmax.f32 %v284_v40, 0.0  ;;  %v288_v49 = vadd.f32 3.0, %v160_v28  ;;  %921 = vst [vmem:[%s1438_s17 + $0x78] sm:$0xff] %v793_v42  ;;  %v413_v50 = vmax.f32 %v285_v43, 0.0  ;;  %v289_v53 = vadd.f32 3.0, %v161_v41 }
  0x52   : > { %v414_v51 = vmax.f32 %v286_v44, 0.0  ;;  %v415_v52 = vmax.f32 %v287_v45, 0.0  ;;  %v538_v54 = vmin.f32 %v410_v46, 6.0  ;;  %v539_v55 = vmin.f32 %v411_v47, 6.0  ;;  %v170_v46 = vld [vmem:[%s1415_s30 + $0x100] sm:$0xff] }
  0x53   : > { %v540_v56 = vmin.f32 %v412_v48, 6.0  ;;  %v416_v57 = vmax.f32 %v288_v49, 0.0  ;;  %v541_v58 = vmin.f32 %v413_v50, 6.0  ;;  %v417_v61 = vmax.f32 %v289_v53, 0.0  ;;  %v173_v53 = vld [vmem:[%s1415_s30 + $0x118] sm:$0xff] }
  0x54   : > { %v542_v59 = vmin.f32 %v414_v51, 6.0  ;;  %v543_v60 = vmin.f32 %v415_v52, 6.0  ;;  %v666_v63 = vmul.f32 %v538_v54, %v154_v14  ;;  %v667_v0 = vmul.f32 %v539_v55, %v155_v19  ;;  %v171_v51 = vld [vmem:[%s1415_s30 + $0x108] sm:$0xff]  ;;  %v172_v52 = vld [vmem:[%s1415_s30 + $0x110] sm:$0xff] }
  0x55   : > { %v668_v1 = vmul.f32 %v540_v56, %v156_v20  ;;  %v544_v2 = vmin.f32 %v416_v57, 6.0  ;;  %v669_v6 = vmul.f32 %v541_v58, %v157_v21  ;;  %v545_v9 = vmin.f32 %v417_v61, 6.0  ;;  %v174_v58 = vld [vmem:[%s1415_s30 + $0x120] sm:$0xff] }
  0x56   : > { %v670_v7 = vmul.f32 %v542_v59, %v158_v26  ;;  %v671_v8 = vmul.f32 %v543_v60, %v159_v27  ;;  %v794_v13 = vmul.f32 0.16666667, %v666_v63  ;;  %v795_v14 = vmul.f32 0.16666667, %v667_v0  ;;  %v175_v59 = vld [vmem:[%s1415_s30 + $0x128] sm:$0xff]  ;;  %v176_v60 = vld [vmem:[%s1415_s30 + $0x130] sm:$0xff] }
  0x57   : > { %v796_v15 = vmul.f32 0.16666667, %v668_v1  ;;  %v672_v16 = vmul.f32 %v544_v2, %v160_v28  ;;  %v797_v17 = vmul.f32 0.16666667, %v669_v6  ;;  %v673_v20 = vmul.f32 %v545_v9, %v161_v41  ;;  %v177_v9 = vld [vmem:[%s1415_s30 + $0x138] sm:$0xff] }
  0x58   : > { %v798_v18 = vmul.f32 0.16666667, %v670_v7  ;;  %v799_v19 = vmul.f32 0.16666667, %v671_v8  ;;  %922 = vst [vmem:[%s1438_s17 + $0x80] sm:$0xff] %v794_v13  ;;  %923 = vst [vmem:[%s1438_s17 + $0x88] sm:$0xff] %v795_v14 }
  0x59   : > { %924 = vst [vmem:[%s1438_s17 + $0x90] sm:$0xff] %v796_v15  ;;  %v800_v21 = vmul.f32 0.16666667, %v672_v16  ;;  %v290_v22 = vadd.f32 3.0, %v162_v62  ;;  %v291_v23 = vadd.f32 3.0, %v163_v3  ;;  %v292_v24 = vadd.f32 3.0, %v164_v4 }
  0x5a   : > { %925 = vst [vmem:[%s1438_s17 + $0x98] sm:$0xff] %v797_v17  ;;  %926 = vst [vmem:[%s1438_s17 + $0xa0] sm:$0xff] %v798_v18  ;;  %v801_v26 = vmul.f32 0.16666667, %v673_v20  ;;  %v293_v27 = vadd.f32 3.0, %v165_v5  ;;  %v294_v28 = vadd.f32 3.0, %v166_v10 }
  0x5b   : > { %927 = vst [vmem:[%s1438_s17 + $0xa8] sm:$0xff] %v799_v19  ;;  %v295_v29 = vadd.f32 3.0, %v167_v11  ;;  %928 = vst [vmem:[%s1438_s17 + $0xb0] sm:$0xff] %v800_v21  ;;  %v418_v30 = vmax.f32 %v290_v22, 0.0  ;;  %v419_v31 = vmax.f32 %v291_v23, 0.0  ;;  %v420_v32 = vmax.f32 %v292_v24, 0.0 }
  0x5c   : > { %v296_v33 = vadd.f32 3.0, %v168_v12  ;;  %929 = vst [vmem:[%s1438_s17 + $0xb8] sm:$0xff] %v801_v26  ;;  %v421_v34 = vmax.f32 %v293_v27, 0.0  ;;  %v422_v35 = vmax.f32 %v294_v28, 0.0  ;;  %v297_v37 = vadd.f32 3.0, %v169_v25 }
  0x5d   : > { %v423_v36 = vmax.f32 %v295_v29, 0.0  ;;  %v546_v38 = vmin.f32 %v418_v30, 6.0  ;;  %v547_v39 = vmin.f32 %v419_v31, 6.0  ;;  %v548_v40 = vmin.f32 %v420_v32, 6.0  ;;  %v178_v30 = vld [vmem:[%s1415_s30 + $0x140] sm:$0xff] }
  0x5e   : > { %v424_v41 = vmax.f32 %v296_v33, 0.0  ;;  %v549_v42 = vmin.f32 %v421_v34, 6.0  ;;  %v550_v43 = vmin.f32 %v422_v35, 6.0  ;;  %v425_v45 = vmax.f32 %v297_v37, 0.0  ;;  %v179_v35 = vld [vmem:[%s1415_s30 + $0x148] sm:$0xff]  ;;  %v181_v37 = vld [vmem:[%s1415_s30 + $0x158] sm:$0xff] }
  0x5f   : > { %v551_v44 = vmin.f32 %v423_v36, 6.0  ;;  %v674_v47 = vmul.f32 %v546_v38, %v162_v62  ;;  %v675_v48 = vmul.f32 %v547_v39, %v163_v3  ;;  %v676_v49 = vmul.f32 %v548_v40, %v164_v4  ;;  %v180_v36 = vld [vmem:[%s1415_s30 + $0x150] sm:$0xff] }
  0x60   : > { %v552_v50 = vmin.f32 %v424_v41, 6.0  ;;  %v677_v54 = vmul.f32 %v549_v42, %v165_v5  ;;  %v678_v55 = vmul.f32 %v550_v43, %v166_v10  ;;  %v553_v57 = vmin.f32 %v425_v45, 6.0  ;;  %v182_v42 = vld [vmem:[%s1415_s30 + $0x160] sm:$0xff]  ;;  %v183_v43 = vld [vmem:[%s1415_s30 + $0x168] sm:$0xff] }
  0x61   : > { %v679_v56 = vmul.f32 %v551_v44, %v167_v11  ;;  %v802_v61 = vmul.f32 0.16666667, %v674_v47  ;;  %v803_v62 = vmul.f32 0.16666667, %v675_v48  ;;  %v804_v63 = vmul.f32 0.16666667, %v676_v49 }
  0x62   : > { %v680_v0 = vmul.f32 %v552_v50, %v168_v12  ;;  %v805_v1 = vmul.f32 0.16666667, %v677_v54  ;;  %v806_v2 = vmul.f32 0.16666667, %v678_v55  ;;  %v681_v4 = vmul.f32 %v553_v57, %v169_v25  ;;  %v184_v44 = vld [vmem:[%s1415_s30 + $0x170] sm:$0xff]  ;;  %v185_v57 = vld [vmem:[%s1415_s30 + $0x178] sm:$0xff] }
  0x63   : > { %v807_v3 = vmul.f32 0.16666667, %v679_v56  ;;  %930 = vst [vmem:[%s1438_s17 + $0xc0] sm:$0xff] %v802_v61  ;;  %931 = vst [vmem:[%s1438_s17 + $0xc8] sm:$0xff] %v803_v62  ;;  %v298_v6 = vadd.f32 3.0, %v170_v46  ;;  %v299_v7 = vadd.f32 3.0, %v171_v51 }
  0x64   : > { %932 = vst [vmem:[%s1438_s17 + $0xd0] sm:$0xff] %v804_v63  ;;  %v808_v5 = vmul.f32 0.16666667, %v680_v0  ;;  %v300_v8 = vadd.f32 3.0, %v172_v52  ;;  %933 = vst [vmem:[%s1438_s17 + $0xd8] sm:$0xff] %v805_v1  ;;  %v301_v11 = vadd.f32 3.0, %v173_v53 }
  0x65   : > { %934 = vst [vmem:[%s1438_s17 + $0xe0] sm:$0xff] %v806_v2  ;;  %935 = vst [vmem:[%s1438_s17 + $0xe8] sm:$0xff] %v807_v3  ;;  %v809_v10 = vmul.f32 0.16666667, %v681_v4  ;;  %v302_v12 = vadd.f32 3.0, %v174_v58  ;;  %v303_v13 = vadd.f32 3.0, %v175_v59 }
  0x66   : > { %936 = vst [vmem:[%s1438_s17 + $0xf0] sm:$0xff] %v808_v5  ;;  %v426_v14 = vmax.f32 %v298_v6, 0.0  ;;  %v427_v15 = vmax.f32 %v299_v7, 0.0  ;;  %v428_v16 = vmax.f32 %v300_v8, 0.0  ;;  %v304_v17 = vadd.f32 3.0, %v176_v60 }
  0x67   : > { %937 = vst [vmem:[%s1438_s17 + $0xf8] sm:$0xff] %v809_v10  ;;  %v429_v18 = vmax.f32 %v301_v11, 0.0  ;;  %v430_v19 = vmax.f32 %v302_v12, 0.0  ;;  %v431_v20 = vmax.f32 %v303_v13, 0.0  ;;  %v305_v21 = vadd.f32 3.0, %v177_v9 }
  0x68   : > { %v554_v22 = vmin.f32 %v426_v14, 6.0  ;;  %v555_v23 = vmin.f32 %v427_v15, 6.0  ;;  %v556_v24 = vmin.f32 %v428_v16, 6.0  ;;  %v432_v25 = vmax.f32 %v304_v17, 0.0  ;;  %v186_v14 = vld [vmem:[%s1415_s30 + $0x180] sm:$0xff] }
  0x69   : > { %v557_v26 = vmin.f32 %v429_v18, 6.0  ;;  %v558_v27 = vmin.f32 %v430_v19, 6.0  ;;  %v559_v28 = vmin.f32 %v431_v20, 6.0  ;;  %v433_v29 = vmax.f32 %v305_v21, 0.0  ;;  %v187_v19 = vld [vmem:[%s1415_s30 + $0x188] sm:$0xff]  ;;  %v188_v20 = vld [vmem:[%s1415_s30 + $0x190] sm:$0xff] }
  0x6a   : > { %v682_v31 = vmul.f32 %v554_v22, %v170_v46  ;;  %v683_v32 = vmul.f32 %v555_v23, %v171_v51  ;;  %v684_v33 = vmul.f32 %v556_v24, %v172_v52  ;;  %v560_v34 = vmin.f32 %v432_v25, 6.0  ;;  %v189_v21 = vld [vmem:[%s1415_s30 + $0x198] sm:$0xff] }
  0x6b   : > { %v685_v38 = vmul.f32 %v557_v26, %v173_v53  ;;  %v686_v39 = vmul.f32 %v558_v27, %v174_v58  ;;  %v687_v40 = vmul.f32 %v559_v28, %v175_v59  ;;  %v561_v41 = vmin.f32 %v433_v29, 6.0  ;;  %v190_v26 = vld [vmem:[%s1415_s30 + $0x1a0] sm:$0xff]  ;;  %v191_v27 = vld [vmem:[%s1415_s30 + $0x1a8] sm:$0xff]  ;;  %v192_v28 = vld [vmem:[%s1415_s30 + $0x1b0] sm:$0xff] }
  0x6c   : > { %v810_v45 = vmul.f32 0.16666667, %v682_v31  ;;  %v811_v46 = vmul.f32 0.16666667, %v683_v32  ;;  %v812_v47 = vmul.f32 0.16666667, %v684_v33  ;;  %v688_v48 = vmul.f32 %v560_v34, %v176_v60 }
  0x6d   : > { %v813_v49 = vmul.f32 0.16666667, %v685_v38  ;;  %v814_v50 = vmul.f32 0.16666667, %v686_v39  ;;  %v815_v51 = vmul.f32 0.16666667, %v687_v40  ;;  %v689_v52 = vmul.f32 %v561_v41, %v177_v9 }
  0x6e   : > { %938 = vst [vmem:[%s1438_s17 + $0x100] sm:$0xff] %v810_v45  ;;  %939 = vst [vmem:[%s1438_s17 + $0x108] sm:$0xff] %v811_v46  ;;  %v816_v53 = vmul.f32 0.16666667, %v688_v48  ;;  %v306_v54 = vadd.f32 3.0, %v178_v30  ;;  %v307_v55 = vadd.f32 3.0, %v179_v35 }
  0x6f   : > { %940 = vst [vmem:[%s1438_s17 + $0x110] sm:$0xff] %v812_v47  ;;  %v308_v56 = vadd.f32 3.0, %v180_v36  ;;  %941 = vst [vmem:[%s1438_s17 + $0x118] sm:$0xff] %v813_v49  ;;  %v817_v58 = vmul.f32 0.16666667, %v689_v52  ;;  %v309_v59 = vadd.f32 3.0, %v181_v37 }
  0x70   : > { %942 = vst [vmem:[%s1438_s17 + $0x120] sm:$0xff] %v814_v50  ;;  %943 = vst [vmem:[%s1438_s17 + $0x128] sm:$0xff] %v815_v51  ;;  %v310_v60 = vadd.f32 3.0, %v182_v42  ;;  %v311_v61 = vadd.f32 3.0, %v183_v43  ;;  %v434_v62 = vmax.f32 %v306_v54, 0.0  ;;  %v435_v63 = vmax.f32 %v307_v55, 0.0 }
  0x71   : > { %944 = vst [vmem:[%s1438_s17 + $0x130] sm:$0xff] %v816_v53  ;;  %v436_v0 = vmax.f32 %v308_v56, 0.0  ;;  %v312_v1 = vadd.f32 3.0, %v184_v44  ;;  %945 = vst [vmem:[%s1438_s17 + $0x138] sm:$0xff] %v817_v58  ;;  %v437_v2 = vmax.f32 %v309_v59, 0.0  ;;  %v313_v5 = vadd.f32 3.0, %v185_v57 }
  0x72   : > { %v438_v3 = vmax.f32 %v310_v60, 0.0  ;;  %v439_v4 = vmax.f32 %v311_v61, 0.0  ;;  %v562_v6 = vmin.f32 %v434_v62, 6.0  ;;  %v563_v7 = vmin.f32 %v435_v63, 6.0  ;;  %v193_v41 = vld [vmem:[%s1415_s30 + $0x1b8] sm:$0xff]  ;;  %v194_v62 = vld [vmem:[%s1415_s30 + $0x1c0] sm:$0xff] }
  0x73   : > { %v564_v8 = vmin.f32 %v436_v0, 6.0  ;;  %v440_v9 = vmax.f32 %v312_v1, 0.0  ;;  %v565_v10 = vmin.f32 %v437_v2, 6.0  ;;  %v441_v13 = vmax.f32 %v313_v5, 0.0  ;;  %v197_v5 = vld [vmem:[%s1415_s30 + $0x1d8] sm:$0xff] }
  0x74   : > { %v566_v11 = vmin.f32 %v438_v3, 6.0  ;;  %v567_v12 = vmin.f32 %v439_v4, 6.0  ;;  %v690_v15 = vmul.f32 %v562_v6, %v178_v30  ;;  %v691_v16 = vmul.f32 %v563_v7, %v179_v35  ;;  %v195_v3 = vld [vmem:[%s1415_s30 + $0x1c8] sm:$0xff]  ;;  %v196_v4 = vld [vmem:[%s1415_s30 + $0x1d0] sm:$0xff] }
  0x75   : > { %v692_v17 = vmul.f32 %v564_v8, %v180_v36  ;;  %v568_v18 = vmin.f32 %v440_v9, 6.0  ;;  %v693_v22 = vmul.f32 %v565_v10, %v181_v37  ;;  %v569_v25 = vmin.f32 %v441_v13, 6.0  ;;  %v198_v10 = vld [vmem:[%s1415_s30 + $0x1e0] sm:$0xff] }
  0x76   : > { %v694_v23 = vmul.f32 %v566_v11, %v182_v42  ;;  %v695_v24 = vmul.f32 %v567_v12, %v183_v43  ;;  %v818_v29 = vmul.f32 0.16666667, %v690_v15  ;;  %v819_v30 = vmul.f32 0.16666667, %v691_v16  ;;  %v199_v11 = vld [vmem:[%s1415_s30 + $0x1e8] sm:$0xff]  ;;  %v200_v12 = vld [vmem:[%s1415_s30 + $0x1f0] sm:$0xff] }
  0x77   : > { %v820_v31 = vmul.f32 0.16666667, %v692_v17  ;;  %v696_v32 = vmul.f32 %v568_v18, %v184_v44  ;;  %v821_v33 = vmul.f32 0.16666667, %v693_v22  ;;  %v697_v36 = vmul.f32 %v569_v25, %v185_v57  ;;  %v201_v25 = vld [vmem:[%s1415_s30 + $0x1f8] sm:$0xff] }
  0x78   : > { %v822_v34 = vmul.f32 0.16666667, %v694_v23  ;;  %v823_v35 = vmul.f32 0.16666667, %v695_v24  ;;  %946 = vst [vmem:[%s1438_s17 + $0x140] sm:$0xff] %v818_v29  ;;  %947 = vst [vmem:[%s1438_s17 + $0x148] sm:$0xff] %v819_v30 }
  0x79   : > { %948 = vst [vmem:[%s1438_s17 + $0x150] sm:$0xff] %v820_v31  ;;  %v824_v37 = vmul.f32 0.16666667, %v696_v32  ;;  %v314_v38 = vadd.f32 3.0, %v186_v14  ;;  %v315_v39 = vadd.f32 3.0, %v187_v19  ;;  %v316_v40 = vadd.f32 3.0, %v188_v20 }
  0x7a   : > { %949 = vst [vmem:[%s1438_s17 + $0x158] sm:$0xff] %v821_v33  ;;  %950 = vst [vmem:[%s1438_s17 + $0x160] sm:$0xff] %v822_v34  ;;  %v825_v42 = vmul.f32 0.16666667, %v697_v36  ;;  %v317_v43 = vadd.f32 3.0, %v189_v21  ;;  %v318_v44 = vadd.f32 3.0, %v190_v26 }
  0x7b   : > { %951 = vst [vmem:[%s1438_s17 + $0x168] sm:$0xff] %v823_v35  ;;  %v319_v45 = vadd.f32 3.0, %v191_v27  ;;  %952 = vst [vmem:[%s1438_s17 + $0x170] sm:$0xff] %v824_v37  ;;  %v442_v46 = vmax.f32 %v314_v38, 0.0  ;;  %v443_v47 = vmax.f32 %v315_v39, 0.0  ;;  %v444_v48 = vmax.f32 %v316_v40, 0.0 }
  0x7c   : > { %v320_v49 = vadd.f32 3.0, %v192_v28  ;;  %953 = vst [vmem:[%s1438_s17 + $0x178] sm:$0xff] %v825_v42  ;;  %v445_v50 = vmax.f32 %v317_v43, 0.0  ;;  %v446_v51 = vmax.f32 %v318_v44, 0.0  ;;  %v321_v53 = vadd.f32 3.0, %v193_v41 }
  0x7d   : > { %v447_v52 = vmax.f32 %v319_v45, 0.0  ;;  %v570_v54 = vmin.f32 %v442_v46, 6.0  ;;  %v571_v55 = vmin.f32 %v443_v47, 6.0  ;;  %v572_v56 = vmin.f32 %v444_v48, 6.0  ;;  %v202_v46 = vld [vmem:[%s1415_s30 + $0x200] sm:$0xff] }
  0x7e   : > { %v448_v57 = vmax.f32 %v320_v49, 0.0  ;;  %v573_v58 = vmin.f32 %v445_v50, 6.0  ;;  %v574_v59 = vmin.f32 %v446_v51, 6.0  ;;  %v449_v61 = vmax.f32 %v321_v53, 0.0  ;;  %v203_v51 = vld [vmem:[%s1415_s30 + $0x208] sm:$0xff]  ;;  %v205_v53 = vld [vmem:[%s1415_s30 + $0x218] sm:$0xff] }
  0x7f   : > { %v575_v60 = vmin.f32 %v447_v52, 6.0  ;;  %v698_v63 = vmul.f32 %v570_v54, %v186_v14  ;;  %v699_v0 = vmul.f32 %v571_v55, %v187_v19  ;;  %v700_v1 = vmul.f32 %v572_v56, %v188_v20  ;;  %v204_v52 = vld [vmem:[%s1415_s30 + $0x210] sm:$0xff] }
  0x80   : > { %v576_v2 = vmin.f32 %v448_v57, 6.0  ;;  %v701_v6 = vmul.f32 %v573_v58, %v189_v21  ;;  %v702_v7 = vmul.f32 %v574_v59, %v190_v26  ;;  %v577_v9 = vmin.f32 %v449_v61, 6.0  ;;  %v206_v58 = vld [vmem:[%s1415_s30 + $0x220] sm:$0xff]  ;;  %v207_v59 = vld [vmem:[%s1415_s30 + $0x228] sm:$0xff] }
  0x81   : > { %v703_v8 = vmul.f32 %v575_v60, %v191_v27  ;;  %v826_v13 = vmul.f32 0.16666667, %v698_v63  ;;  %v827_v14 = vmul.f32 0.16666667, %v699_v0  ;;  %v828_v15 = vmul.f32 0.16666667, %v700_v1 }
  0x82   : > { %v704_v16 = vmul.f32 %v576_v2, %v192_v28  ;;  %v829_v17 = vmul.f32 0.16666667, %v701_v6  ;;  %v830_v18 = vmul.f32 0.16666667, %v702_v7  ;;  %v705_v20 = vmul.f32 %v577_v9, %v193_v41  ;;  %v208_v60 = vld [vmem:[%s1415_s30 + $0x230] sm:$0xff]  ;;  %v209_v9 = vld [vmem:[%s1415_s30 + $0x238] sm:$0xff] }
  0x83   : > { %v831_v19 = vmul.f32 0.16666667, %v703_v8  ;;  %954 = vst [vmem:[%s1438_s17 + $0x180] sm:$0xff] %v826_v13  ;;  %955 = vst [vmem:[%s1438_s17 + $0x188] sm:$0xff] %v827_v14  ;;  %v322_v22 = vadd.f32 3.0, %v194_v62  ;;  %v323_v23 = vadd.f32 3.0, %v195_v3 }
  0x84   : > { %956 = vst [vmem:[%s1438_s17 + $0x190] sm:$0xff] %v828_v15  ;;  %v832_v21 = vmul.f32 0.16666667, %v704_v16  ;;  %v324_v24 = vadd.f32 3.0, %v196_v4  ;;  %957 = vst [vmem:[%s1438_s17 + $0x198] sm:$0xff] %v829_v17  ;;  %v325_v27 = vadd.f32 3.0, %v197_v5 }
  0x85   : > { %958 = vst [vmem:[%s1438_s17 + $0x1a0] sm:$0xff] %v830_v18  ;;  %959 = vst [vmem:[%s1438_s17 + $0x1a8] sm:$0xff] %v831_v19  ;;  %v833_v26 = vmul.f32 0.16666667, %v705_v20  ;;  %v326_v28 = vadd.f32 3.0, %v198_v10  ;;  %v327_v29 = vadd.f32 3.0, %v199_v11 }
  0x86   : > { %960 = vst [vmem:[%s1438_s17 + $0x1b0] sm:$0xff] %v832_v21  ;;  %v450_v30 = vmax.f32 %v322_v22, 0.0  ;;  %v451_v31 = vmax.f32 %v323_v23, 0.0  ;;  %v452_v32 = vmax.f32 %v324_v24, 0.0  ;;  %v328_v33 = vadd.f32 3.0, %v200_v12 }
  0x87   : > { %961 = vst [vmem:[%s1438_s17 + $0x1b8] sm:$0xff] %v833_v26  ;;  %v453_v34 = vmax.f32 %v325_v27, 0.0  ;;  %v454_v35 = vmax.f32 %v326_v28, 0.0  ;;  %v455_v36 = vmax.f32 %v327_v29, 0.0  ;;  %v329_v37 = vadd.f32 3.0, %v201_v25 }
  0x88   : > { %v578_v38 = vmin.f32 %v450_v30, 6.0  ;;  %v579_v39 = vmin.f32 %v451_v31, 6.0  ;;  %v580_v40 = vmin.f32 %v452_v32, 6.0  ;;  %v456_v41 = vmax.f32 %v328_v33, 0.0  ;;  %v210_v30 = vld [vmem:[%s1415_s30 + $0x240] sm:$0xff] }
  0x89   : > { %v581_v42 = vmin.f32 %v453_v34, 6.0  ;;  %v582_v43 = vmin.f32 %v454_v35, 6.0  ;;  %v583_v44 = vmin.f32 %v455_v36, 6.0  ;;  %v457_v45 = vmax.f32 %v329_v37, 0.0  ;;  %v211_v35 = vld [vmem:[%s1415_s30 + $0x248] sm:$0xff]  ;;  %v212_v36 = vld [vmem:[%s1415_s30 + $0x250] sm:$0xff] }
  0x8a   : > { %v706_v47 = vmul.f32 %v578_v38, %v194_v62  ;;  %v707_v48 = vmul.f32 %v579_v39, %v195_v3  ;;  %v708_v49 = vmul.f32 %v580_v40, %v196_v4  ;;  %v584_v50 = vmin.f32 %v456_v41, 6.0  ;;  %v213_v37 = vld [vmem:[%s1415_s30 + $0x258] sm:$0xff] }
  0x8b   : > { %v709_v54 = vmul.f32 %v581_v42, %v197_v5  ;;  %v710_v55 = vmul.f32 %v582_v43, %v198_v10  ;;  %v711_v56 = vmul.f32 %v583_v44, %v199_v11  ;;  %v585_v57 = vmin.f32 %v457_v45, 6.0  ;;  %v214_v42 = vld [vmem:[%s1415_s30 + $0x260] sm:$0xff]  ;;  %v215_v43 = vld [vmem:[%s1415_s30 + $0x268] sm:$0xff]  ;;  %v216_v44 = vld [vmem:[%s1415_s30 + $0x270] sm:$0xff] }
  0x8c   : > { %v834_v61 = vmul.f32 0.16666667, %v706_v47  ;;  %v835_v62 = vmul.f32 0.16666667, %v707_v48  ;;  %v836_v63 = vmul.f32 0.16666667, %v708_v49  ;;  %v712_v0 = vmul.f32 %v584_v50, %v200_v12 }
  0x8d   : > { %v837_v1 = vmul.f32 0.16666667, %v709_v54  ;;  %v838_v2 = vmul.f32 0.16666667, %v710_v55  ;;  %v839_v3 = vmul.f32 0.16666667, %v711_v56  ;;  %v713_v4 = vmul.f32 %v585_v57, %v201_v25 }
  0x8e   : > { %962 = vst [vmem:[%s1438_s17 + $0x1c0] sm:$0xff] %v834_v61  ;;  %963 = vst [vmem:[%s1438_s17 + $0x1c8] sm:$0xff] %v835_v62  ;;  %v840_v5 = vmul.f32 0.16666667, %v712_v0  ;;  %v330_v6 = vadd.f32 3.0, %v202_v46  ;;  %v331_v7 = vadd.f32 3.0, %v203_v51 }
  0x8f   : > { %964 = vst [vmem:[%s1438_s17 + $0x1d0] sm:$0xff] %v836_v63  ;;  %v332_v8 = vadd.f32 3.0, %v204_v52  ;;  %965 = vst [vmem:[%s1438_s17 + $0x1d8] sm:$0xff] %v837_v1  ;;  %v841_v10 = vmul.f32 0.16666667, %v713_v4  ;;  %v333_v11 = vadd.f32 3.0, %v205_v53 }
  0x90   : > { %966 = vst [vmem:[%s1438_s17 + $0x1e0] sm:$0xff] %v838_v2  ;;  %967 = vst [vmem:[%s1438_s17 + $0x1e8] sm:$0xff] %v839_v3  ;;  %v334_v12 = vadd.f32 3.0, %v206_v58  ;;  %v335_v13 = vadd.f32 3.0, %v207_v59  ;;  %v458_v14 = vmax.f32 %v330_v6, 0.0  ;;  %v459_v15 = vmax.f32 %v331_v7, 0.0 }
  0x91   : > { %968 = vst [vmem:[%s1438_s17 + $0x1f0] sm:$0xff] %v840_v5  ;;  %v460_v16 = vmax.f32 %v332_v8, 0.0  ;;  %v336_v17 = vadd.f32 3.0, %v208_v60  ;;  %969 = vst [vmem:[%s1438_s17 + $0x1f8] sm:$0xff] %v841_v10  ;;  %v461_v18 = vmax.f32 %v333_v11, 0.0  ;;  %v337_v21 = vadd.f32 3.0, %v209_v9 }
  0x92   : > { %v462_v19 = vmax.f32 %v334_v12, 0.0  ;;  %v463_v20 = vmax.f32 %v335_v13, 0.0  ;;  %v586_v22 = vmin.f32 %v458_v14, 6.0  ;;  %v587_v23 = vmin.f32 %v459_v15, 6.0  ;;  %v217_v57 = vld [vmem:[%s1415_s30 + $0x278] sm:$0xff]  ;;  %v218_v14 = vld [vmem:[%s1415_s30 + $0x280] sm:$0xff] }
  0x93   : > { %v588_v24 = vmin.f32 %v460_v16, 6.0  ;;  %v464_v25 = vmax.f32 %v336_v17, 0.0  ;;  %v589_v26 = vmin.f32 %v461_v18, 6.0  ;;  %v465_v29 = vmax.f32 %v337_v21, 0.0  ;;  %v221_v21 = vld [vmem:[%s1415_s30 + $0x298] sm:$0xff] }
  0x94   : > { %v590_v27 = vmin.f32 %v462_v19, 6.0  ;;  %v591_v28 = vmin.f32 %v463_v20, 6.0  ;;  %v714_v31 = vmul.f32 %v586_v22, %v202_v46  ;;  %v715_v32 = vmul.f32 %v587_v23, %v203_v51  ;;  %v219_v19 = vld [vmem:[%s1415_s30 + $0x288] sm:$0xff]  ;;  %v220_v20 = vld [vmem:[%s1415_s30 + $0x290] sm:$0xff] }
  0x95   : > { %v716_v33 = vmul.f32 %v588_v24, %v204_v52  ;;  %v592_v34 = vmin.f32 %v464_v25, 6.0  ;;  %v717_v38 = vmul.f32 %v589_v26, %v205_v53  ;;  %v593_v41 = vmin.f32 %v465_v29, 6.0  ;;  %v222_v26 = vld [vmem:[%s1415_s30 + $0x2a0] sm:$0xff] }
  0x96   : > { %v718_v39 = vmul.f32 %v590_v27, %v206_v58  ;;  %v719_v40 = vmul.f32 %v591_v28, %v207_v59  ;;  %v842_v45 = vmul.f32 0.16666667, %v714_v31  ;;  %v843_v46 = vmul.f32 0.16666667, %v715_v32  ;;  %v223_v27 = vld [vmem:[%s1415_s30 + $0x2a8] sm:$0xff]  ;;  %v224_v28 = vld [vmem:[%s1415_s30 + $0x2b0] sm:$0xff] }
  0x97   : > { %v844_v47 = vmul.f32 0.16666667, %v716_v33  ;;  %v720_v48 = vmul.f32 %v592_v34, %v208_v60  ;;  %v845_v49 = vmul.f32 0.16666667, %v717_v38  ;;  %v721_v52 = vmul.f32 %v593_v41, %v209_v9  ;;  %v225_v41 = vld [vmem:[%s1415_s30 + $0x2b8] sm:$0xff] }
  0x98   : > { %v846_v50 = vmul.f32 0.16666667, %v718_v39  ;;  %v847_v51 = vmul.f32 0.16666667, %v719_v40  ;;  %970 = vst [vmem:[%s1438_s17 + $0x200] sm:$0xff] %v842_v45  ;;  %971 = vst [vmem:[%s1438_s17 + $0x208] sm:$0xff] %v843_v46 }
  0x99   : > { %972 = vst [vmem:[%s1438_s17 + $0x210] sm:$0xff] %v844_v47  ;;  %v848_v53 = vmul.f32 0.16666667, %v720_v48  ;;  %v338_v54 = vadd.f32 3.0, %v210_v30  ;;  %v339_v55 = vadd.f32 3.0, %v211_v35  ;;  %v340_v56 = vadd.f32 3.0, %v212_v36 }
  0x9a   : > { %973 = vst [vmem:[%s1438_s17 + $0x218] sm:$0xff] %v845_v49  ;;  %974 = vst [vmem:[%s1438_s17 + $0x220] sm:$0xff] %v846_v50  ;;  %v849_v58 = vmul.f32 0.16666667, %v721_v52  ;;  %v341_v59 = vadd.f32 3.0, %v213_v37  ;;  %v342_v60 = vadd.f32 3.0, %v214_v42 }
  0x9b   : > { %975 = vst [vmem:[%s1438_s17 + $0x228] sm:$0xff] %v847_v51  ;;  %v343_v61 = vadd.f32 3.0, %v215_v43  ;;  %976 = vst [vmem:[%s1438_s17 + $0x230] sm:$0xff] %v848_v53  ;;  %v466_v62 = vmax.f32 %v338_v54, 0.0  ;;  %v467_v63 = vmax.f32 %v339_v55, 0.0  ;;  %v468_v0 = vmax.f32 %v340_v56, 0.0 }
  0x9c   : > { %v344_v1 = vadd.f32 3.0, %v216_v44  ;;  %977 = vst [vmem:[%s1438_s17 + $0x238] sm:$0xff] %v849_v58  ;;  %v469_v2 = vmax.f32 %v341_v59, 0.0  ;;  %v470_v3 = vmax.f32 %v342_v60, 0.0  ;;  %v345_v5 = vadd.f32 3.0, %v217_v57 }
  0x9d   : > { %v471_v4 = vmax.f32 %v343_v61, 0.0  ;;  %v594_v6 = vmin.f32 %v466_v62, 6.0  ;;  %v595_v7 = vmin.f32 %v467_v63, 6.0  ;;  %v596_v8 = vmin.f32 %v468_v0, 6.0  ;;  %v226_v62 = vld [vmem:[%s1415_s30 + $0x2c0] sm:$0xff] }
  0x9e   : > { %v472_v9 = vmax.f32 %v344_v1, 0.0  ;;  %v597_v10 = vmin.f32 %v469_v2, 6.0  ;;  %v598_v11 = vmin.f32 %v470_v3, 6.0  ;;  %v473_v13 = vmax.f32 %v345_v5, 0.0  ;;  %v227_v3 = vld [vmem:[%s1415_s30 + $0x2c8] sm:$0xff]  ;;  %v229_v5 = vld [vmem:[%s1415_s30 + $0x2d8] sm:$0xff] }
  0x9f   : > { %v599_v12 = vmin.f32 %v471_v4, 6.0  ;;  %v722_v15 = vmul.f32 %v594_v6, %v210_v30  ;;  %v723_v16 = vmul.f32 %v595_v7, %v211_v35  ;;  %v724_v17 = vmul.f32 %v596_v8, %v212_v36  ;;  %v228_v4 = vld [vmem:[%s1415_s30 + $0x2d0] sm:$0xff] }
  0xa0   : > { %v600_v18 = vmin.f32 %v472_v9, 6.0  ;;  %v725_v22 = vmul.f32 %v597_v10, %v213_v37  ;;  %v726_v23 = vmul.f32 %v598_v11, %v214_v42  ;;  %v601_v25 = vmin.f32 %v473_v13, 6.0  ;;  %v230_v10 = vld [vmem:[%s1415_s30 + $0x2e0] sm:$0xff]  ;;  %v231_v11 = vld [vmem:[%s1415_s30 + $0x2e8] sm:$0xff] }
  0xa1   : > { %v727_v24 = vmul.f32 %v599_v12, %v215_v43  ;;  %v850_v29 = vmul.f32 0.16666667, %v722_v15  ;;  %v851_v30 = vmul.f32 0.16666667, %v723_v16  ;;  %v852_v31 = vmul.f32 0.16666667, %v724_v17 }
  0xa2   : > { %v728_v32 = vmul.f32 %v600_v18, %v216_v44  ;;  %v853_v33 = vmul.f32 0.16666667, %v725_v22  ;;  %v854_v34 = vmul.f32 0.16666667, %v726_v23  ;;  %v729_v36 = vmul.f32 %v601_v25, %v217_v57  ;;  %v232_v12 = vld [vmem:[%s1415_s30 + $0x2f0] sm:$0xff]  ;;  %v233_v25 = vld [vmem:[%s1415_s30 + $0x2f8] sm:$0xff] }
  0xa3   : > { %v855_v35 = vmul.f32 0.16666667, %v727_v24  ;;  %978 = vst [vmem:[%s1438_s17 + $0x240] sm:$0xff] %v850_v29  ;;  %979 = vst [vmem:[%s1438_s17 + $0x248] sm:$0xff] %v851_v30  ;;  %v346_v38 = vadd.f32 3.0, %v218_v14  ;;  %v347_v39 = vadd.f32 3.0, %v219_v19 }
  0xa4   : > { %980 = vst [vmem:[%s1438_s17 + $0x250] sm:$0xff] %v852_v31  ;;  %v856_v37 = vmul.f32 0.16666667, %v728_v32  ;;  %v348_v40 = vadd.f32 3.0, %v220_v20  ;;  %981 = vst [vmem:[%s1438_s17 + $0x258] sm:$0xff] %v853_v33  ;;  %v349_v43 = vadd.f32 3.0, %v221_v21 }
  0xa5   : > { %982 = vst [vmem:[%s1438_s17 + $0x260] sm:$0xff] %v854_v34  ;;  %983 = vst [vmem:[%s1438_s17 + $0x268] sm:$0xff] %v855_v35  ;;  %v857_v42 = vmul.f32 0.16666667, %v729_v36  ;;  %v350_v44 = vadd.f32 3.0, %v222_v26  ;;  %v351_v45 = vadd.f32 3.0, %v223_v27 }
  0xa6   : > { %984 = vst [vmem:[%s1438_s17 + $0x270] sm:$0xff] %v856_v37  ;;  %v474_v46 = vmax.f32 %v346_v38, 0.0  ;;  %v475_v47 = vmax.f32 %v347_v39, 0.0  ;;  %v476_v48 = vmax.f32 %v348_v40, 0.0  ;;  %v352_v49 = vadd.f32 3.0, %v224_v28 }
  0xa7   : > { %985 = vst [vmem:[%s1438_s17 + $0x278] sm:$0xff] %v857_v42  ;;  %v477_v50 = vmax.f32 %v349_v43, 0.0  ;;  %v478_v51 = vmax.f32 %v350_v44, 0.0  ;;  %v479_v52 = vmax.f32 %v351_v45, 0.0  ;;  %v353_v53 = vadd.f32 3.0, %v225_v41 }
  0xa8   : > { %v602_v54 = vmin.f32 %v474_v46, 6.0  ;;  %v603_v55 = vmin.f32 %v475_v47, 6.0  ;;  %v604_v56 = vmin.f32 %v476_v48, 6.0  ;;  %v480_v57 = vmax.f32 %v352_v49, 0.0  ;;  %v234_v46 = vld [vmem:[%s1415_s30 + $0x300] sm:$0xff] }
  0xa9   : > { %v605_v58 = vmin.f32 %v477_v50, 6.0  ;;  %v606_v59 = vmin.f32 %v478_v51, 6.0  ;;  %v607_v60 = vmin.f32 %v479_v52, 6.0  ;;  %v481_v61 = vmax.f32 %v353_v53, 0.0  ;;  %v235_v51 = vld [vmem:[%s1415_s30 + $0x308] sm:$0xff]  ;;  %v236_v52 = vld [vmem:[%s1415_s30 + $0x310] sm:$0xff] }
  0xaa   : > { %v730_v63 = vmul.f32 %v602_v54, %v218_v14  ;;  %v731_v0 = vmul.f32 %v603_v55, %v219_v19  ;;  %v732_v1 = vmul.f32 %v604_v56, %v220_v20  ;;  %v608_v2 = vmin.f32 %v480_v57, 6.0  ;;  %v237_v53 = vld [vmem:[%s1415_s30 + $0x318] sm:$0xff] }
  0xab   : > { %v733_v6 = vmul.f32 %v605_v58, %v221_v21  ;;  %v734_v7 = vmul.f32 %v606_v59, %v222_v26  ;;  %v735_v8 = vmul.f32 %v607_v60, %v223_v27  ;;  %v609_v9 = vmin.f32 %v481_v61, 6.0  ;;  %v238_v58 = vld [vmem:[%s1415_s30 + $0x320] sm:$0xff]  ;;  %v239_v59 = vld [vmem:[%s1415_s30 + $0x328] sm:$0xff]  ;;  %v240_v60 = vld [vmem:[%s1415_s30 + $0x330] sm:$0xff] }
  0xac   : > { %v858_v13 = vmul.f32 0.16666667, %v730_v63  ;;  %v859_v14 = vmul.f32 0.16666667, %v731_v0  ;;  %v860_v15 = vmul.f32 0.16666667, %v732_v1  ;;  %v736_v16 = vmul.f32 %v608_v2, %v224_v28 }
  0xad   : > { %v861_v17 = vmul.f32 0.16666667, %v733_v6  ;;  %v862_v18 = vmul.f32 0.16666667, %v734_v7  ;;  %v863_v19 = vmul.f32 0.16666667, %v735_v8  ;;  %v737_v20 = vmul.f32 %v609_v9, %v225_v41 }
  0xae   : > { %986 = vst [vmem:[%s1438_s17 + $0x280] sm:$0xff] %v858_v13  ;;  %987 = vst [vmem:[%s1438_s17 + $0x288] sm:$0xff] %v859_v14  ;;  %v864_v21 = vmul.f32 0.16666667, %v736_v16  ;;  %v354_v22 = vadd.f32 3.0, %v226_v62  ;;  %v355_v23 = vadd.f32 3.0, %v227_v3 }
  0xaf   : > { %988 = vst [vmem:[%s1438_s17 + $0x290] sm:$0xff] %v860_v15  ;;  %v356_v24 = vadd.f32 3.0, %v228_v4  ;;  %989 = vst [vmem:[%s1438_s17 + $0x298] sm:$0xff] %v861_v17  ;;  %v865_v26 = vmul.f32 0.16666667, %v737_v20  ;;  %v357_v27 = vadd.f32 3.0, %v229_v5 }
  0xb0   : > { %990 = vst [vmem:[%s1438_s17 + $0x2a0] sm:$0xff] %v862_v18  ;;  %991 = vst [vmem:[%s1438_s17 + $0x2a8] sm:$0xff] %v863_v19  ;;  %v358_v28 = vadd.f32 3.0, %v230_v10  ;;  %v359_v29 = vadd.f32 3.0, %v231_v11  ;;  %v482_v30 = vmax.f32 %v354_v22, 0.0  ;;  %v483_v31 = vmax.f32 %v355_v23, 0.0 }
  0xb1   : > { %992 = vst [vmem:[%s1438_s17 + $0x2b0] sm:$0xff] %v864_v21  ;;  %v484_v32 = vmax.f32 %v356_v24, 0.0  ;;  %v360_v33 = vadd.f32 3.0, %v232_v12  ;;  %993 = vst [vmem:[%s1438_s17 + $0x2b8] sm:$0xff] %v865_v26  ;;  %v485_v34 = vmax.f32 %v357_v27, 0.0  ;;  %v361_v37 = vadd.f32 3.0, %v233_v25 }
  0xb2   : > { %v486_v35 = vmax.f32 %v358_v28, 0.0  ;;  %v487_v36 = vmax.f32 %v359_v29, 0.0  ;;  %v610_v38 = vmin.f32 %v482_v30, 6.0  ;;  %v611_v39 = vmin.f32 %v483_v31, 6.0  ;;  %v241_v9 = vld [vmem:[%s1415_s30 + $0x338] sm:$0xff]  ;;  %v242_v30 = vld [vmem:[%s1415_s30 + $0x340] sm:$0xff] }
  0xb3   : > { %v612_v40 = vmin.f32 %v484_v32, 6.0  ;;  %v488_v41 = vmax.f32 %v360_v33, 0.0  ;;  %v613_v42 = vmin.f32 %v485_v34, 6.0  ;;  %v489_v45 = vmax.f32 %v361_v37, 0.0  ;;  %v245_v37 = vld [vmem:[%s1415_s30 + $0x358] sm:$0xff] }
  0xb4   : > { %v614_v43 = vmin.f32 %v486_v35, 6.0  ;;  %v615_v44 = vmin.f32 %v487_v36, 6.0  ;;  %v738_v47 = vmul.f32 %v610_v38, %v226_v62  ;;  %v739_v48 = vmul.f32 %v611_v39, %v227_v3  ;;  %v243_v35 = vld [vmem:[%s1415_s30 + $0x348] sm:$0xff]  ;;  %v244_v36 = vld [vmem:[%s1415_s30 + $0x350] sm:$0xff] }
  0xb5   : > { %v740_v49 = vmul.f32 %v612_v40, %v228_v4  ;;  %v616_v50 = vmin.f32 %v488_v41, 6.0  ;;  %v741_v54 = vmul.f32 %v613_v42, %v229_v5  ;;  %v617_v57 = vmin.f32 %v489_v45, 6.0  ;;  %v246_v42 = vld [vmem:[%s1415_s30 + $0x360] sm:$0xff] }
  0xb6   : > { %v742_v55 = vmul.f32 %v614_v43, %v230_v10  ;;  %v743_v56 = vmul.f32 %v615_v44, %v231_v11  ;;  %v866_v61 = vmul.f32 0.16666667, %v738_v47  ;;  %v867_v62 = vmul.f32 0.16666667, %v739_v48  ;;  %v247_v43 = vld [vmem:[%s1415_s30 + $0x368] sm:$0xff]  ;;  %v248_v44 = vld [vmem:[%s1415_s30 + $0x370] sm:$0xff] }
  0xb7   : > { %v868_v63 = vmul.f32 0.16666667, %v740_v49  ;;  %v744_v0 = vmul.f32 %v616_v50, %v232_v12  ;;  %v869_v1 = vmul.f32 0.16666667, %v741_v54  ;;  %v745_v4 = vmul.f32 %v617_v57, %v233_v25  ;;  %v249_v57 = vld [vmem:[%s1415_s30 + $0x378] sm:$0xff] }
  0xb8   : > { %v870_v2 = vmul.f32 0.16666667, %v742_v55  ;;  %v871_v3 = vmul.f32 0.16666667, %v743_v56  ;;  %994 = vst [vmem:[%s1438_s17 + $0x2c0] sm:$0xff] %v866_v61  ;;  %995 = vst [vmem:[%s1438_s17 + $0x2c8] sm:$0xff] %v867_v62 }
  0xb9   : > { %996 = vst [vmem:[%s1438_s17 + $0x2d0] sm:$0xff] %v868_v63  ;;  %v872_v5 = vmul.f32 0.16666667, %v744_v0  ;;  %v362_v6 = vadd.f32 3.0, %v234_v46  ;;  %v363_v7 = vadd.f32 3.0, %v235_v51  ;;  %v364_v8 = vadd.f32 3.0, %v236_v52 }
  0xba   : > { %997 = vst [vmem:[%s1438_s17 + $0x2d8] sm:$0xff] %v869_v1  ;;  %998 = vst [vmem:[%s1438_s17 + $0x2e0] sm:$0xff] %v870_v2  ;;  %v873_v10 = vmul.f32 0.16666667, %v745_v4  ;;  %v365_v11 = vadd.f32 3.0, %v237_v53  ;;  %v366_v12 = vadd.f32 3.0, %v238_v58 }
  0xbb   : > { %999 = vst [vmem:[%s1438_s17 + $0x2e8] sm:$0xff] %v871_v3  ;;  %v367_v13 = vadd.f32 3.0, %v239_v59  ;;  %1000 = vst [vmem:[%s1438_s17 + $0x2f0] sm:$0xff] %v872_v5  ;;  %v490_v14 = vmax.f32 %v362_v6, 0.0  ;;  %v491_v15 = vmax.f32 %v363_v7, 0.0  ;;  %v492_v16 = vmax.f32 %v364_v8, 0.0 }
  0xbc   : > { %v368_v17 = vadd.f32 3.0, %v240_v60  ;;  %1001 = vst [vmem:[%s1438_s17 + $0x2f8] sm:$0xff] %v873_v10  ;;  %v493_v18 = vmax.f32 %v365_v11, 0.0  ;;  %v494_v19 = vmax.f32 %v366_v12, 0.0  ;;  %v369_v21 = vadd.f32 3.0, %v241_v9 }
  0xbd   : > { %v495_v20 = vmax.f32 %v367_v13, 0.0  ;;  %v618_v22 = vmin.f32 %v490_v14, 6.0  ;;  %v619_v23 = vmin.f32 %v491_v15, 6.0  ;;  %v620_v24 = vmin.f32 %v492_v16, 6.0  ;;  %v250_v14 = vld [vmem:[%s1415_s30 + $0x380] sm:$0xff] }
  0xbe   : > { %v496_v25 = vmax.f32 %v368_v17, 0.0  ;;  %v621_v26 = vmin.f32 %v493_v18, 6.0  ;;  %v622_v27 = vmin.f32 %v494_v19, 6.0  ;;  %v497_v29 = vmax.f32 %v369_v21, 0.0  ;;  %v251_v19 = vld [vmem:[%s1415_s30 + $0x388] sm:$0xff]  ;;  %v253_v21 = vld [vmem:[%s1415_s30 + $0x398] sm:$0xff] }
  0xbf   : > { %v623_v28 = vmin.f32 %v495_v20, 6.0  ;;  %v746_v31 = vmul.f32 %v618_v22, %v234_v46  ;;  %v747_v32 = vmul.f32 %v619_v23, %v235_v51  ;;  %v748_v33 = vmul.f32 %v620_v24, %v236_v52  ;;  %v252_v20 = vld [vmem:[%s1415_s30 + $0x390] sm:$0xff] }
  0xc0   : > { %v624_v34 = vmin.f32 %v496_v25, 6.0  ;;  %v749_v38 = vmul.f32 %v621_v26, %v237_v53  ;;  %v750_v39 = vmul.f32 %v622_v27, %v238_v58  ;;  %v625_v41 = vmin.f32 %v497_v29, 6.0  ;;  %v254_v26 = vld [vmem:[%s1415_s30 + $0x3a0] sm:$0xff]  ;;  %v255_v27 = vld [vmem:[%s1415_s30 + $0x3a8] sm:$0xff] }
  0xc1   : > { %v751_v40 = vmul.f32 %v623_v28, %v239_v59  ;;  %v874_v45 = vmul.f32 0.16666667, %v746_v31  ;;  %v875_v46 = vmul.f32 0.16666667, %v747_v32  ;;  %v876_v47 = vmul.f32 0.16666667, %v748_v33 }
  0xc2   : > { %v752_v48 = vmul.f32 %v624_v34, %v240_v60  ;;  %v877_v49 = vmul.f32 0.16666667, %v749_v38  ;;  %v878_v50 = vmul.f32 0.16666667, %v750_v39  ;;  %v753_v52 = vmul.f32 %v625_v41, %v241_v9  ;;  %v256_v28 = vld [vmem:[%s1415_s30 + $0x3b0] sm:$0xff]  ;;  %v257_v41 = vld [vmem:[%s1415_s30 + $0x3b8] sm:$0xff] }
  0xc3   : > { %v879_v51 = vmul.f32 0.16666667, %v751_v40  ;;  %1002 = vst [vmem:[%s1438_s17 + $0x300] sm:$0xff] %v874_v45  ;;  %1003 = vst [vmem:[%s1438_s17 + $0x308] sm:$0xff] %v875_v46  ;;  %v370_v54 = vadd.f32 3.0, %v242_v30  ;;  %v371_v55 = vadd.f32 3.0, %v243_v35 }
  0xc4   : > { %1004 = vst [vmem:[%s1438_s17 + $0x310] sm:$0xff] %v876_v47  ;;  %v880_v53 = vmul.f32 0.16666667, %v752_v48  ;;  %v372_v56 = vadd.f32 3.0, %v244_v36  ;;  %1005 = vst [vmem:[%s1438_s17 + $0x318] sm:$0xff] %v877_v49  ;;  %v373_v59 = vadd.f32 3.0, %v245_v37 }
  0xc5   : > { %1006 = vst [vmem:[%s1438_s17 + $0x320] sm:$0xff] %v878_v50  ;;  %1007 = vst [vmem:[%s1438_s17 + $0x328] sm:$0xff] %v879_v51  ;;  %v881_v58 = vmul.f32 0.16666667, %v753_v52  ;;  %v374_v60 = vadd.f32 3.0, %v246_v42  ;;  %v375_v61 = vadd.f32 3.0, %v247_v43 }
  0xc6   : > { %1008 = vst [vmem:[%s1438_s17 + $0x330] sm:$0xff] %v880_v53  ;;  %v498_v62 = vmax.f32 %v370_v54, 0.0  ;;  %v499_v63 = vmax.f32 %v371_v55, 0.0  ;;  %v500_v0 = vmax.f32 %v372_v56, 0.0  ;;  %v376_v1 = vadd.f32 3.0, %v248_v44 }
  0xc7   : > { %1009 = vst [vmem:[%s1438_s17 + $0x338] sm:$0xff] %v881_v58  ;;  %v501_v2 = vmax.f32 %v373_v59, 0.0  ;;  %v502_v3 = vmax.f32 %v374_v60, 0.0  ;;  %v503_v4 = vmax.f32 %v375_v61, 0.0  ;;  %v377_v5 = vadd.f32 3.0, %v249_v57 }
  0xc8   : > { %v626_v6 = vmin.f32 %v498_v62, 6.0  ;;  %v627_v7 = vmin.f32 %v499_v63, 6.0  ;;  %v628_v8 = vmin.f32 %v500_v0, 6.0  ;;  %v504_v9 = vmax.f32 %v376_v1, 0.0  ;;  %v258_v62 = vld [vmem:[%s1415_s30 + $0x3c0] sm:$0xff] }
  0xc9   : > { %v629_v10 = vmin.f32 %v501_v2, 6.0  ;;  %v630_v11 = vmin.f32 %v502_v3, 6.0  ;;  %v631_v12 = vmin.f32 %v503_v4, 6.0  ;;  %v505_v13 = vmax.f32 %v377_v5, 0.0  ;;  %v259_v3 = vld [vmem:[%s1415_s30 + $0x3c8] sm:$0xff]  ;;  %v260_v4 = vld [vmem:[%s1415_s30 + $0x3d0] sm:$0xff] }
  0xca   : > { %v754_v15 = vmul.f32 %v626_v6, %v242_v30  ;;  %v755_v16 = vmul.f32 %v627_v7, %v243_v35  ;;  %v756_v17 = vmul.f32 %v628_v8, %v244_v36  ;;  %v632_v18 = vmin.f32 %v504_v9, 6.0  ;;  %v261_v5 = vld [vmem:[%s1415_s30 + $0x3d8] sm:$0xff] }
  0xcb   : > { %v757_v22 = vmul.f32 %v629_v10, %v245_v37  ;;  %v758_v23 = vmul.f32 %v630_v11, %v246_v42  ;;  %v759_v24 = vmul.f32 %v631_v12, %v247_v43  ;;  %v633_v25 = vmin.f32 %v505_v13, 6.0  ;;  %v262_v10 = vld [vmem:[%s1415_s30 + $0x3e0] sm:$0xff]  ;;  %v263_v11 = vld [vmem:[%s1415_s30 + $0x3e8] sm:$0xff]  ;;  %v264_v12 = vld [vmem:[%s1415_s30 + $0x3f0] sm:$0xff] }
  0xcc   : > { %v882_v29 = vmul.f32 0.16666667, %v754_v15  ;;  %v883_v30 = vmul.f32 0.16666667, %v755_v16  ;;  %v884_v31 = vmul.f32 0.16666667, %v756_v17  ;;  %v760_v32 = vmul.f32 %v632_v18, %v248_v44 }
  0xcd   : > { %v885_v33 = vmul.f32 0.16666667, %v757_v22  ;;  %v886_v34 = vmul.f32 0.16666667, %v758_v23  ;;  %v887_v35 = vmul.f32 0.16666667, %v759_v24  ;;  %v761_v36 = vmul.f32 %v633_v25, %v249_v57 }
  0xce   : > { %1010 = vst [vmem:[%s1438_s17 + $0x340] sm:$0xff] %v882_v29  ;;  %1011 = vst [vmem:[%s1438_s17 + $0x348] sm:$0xff] %v883_v30  ;;  %v888_v37 = vmul.f32 0.16666667, %v760_v32  ;;  %v378_v38 = vadd.f32 3.0, %v250_v14  ;;  %v379_v39 = vadd.f32 3.0, %v251_v19 }
  0xcf   : > { %1012 = vst [vmem:[%s1438_s17 + $0x350] sm:$0xff] %v884_v31  ;;  %v380_v40 = vadd.f32 3.0, %v252_v20  ;;  %1013 = vst [vmem:[%s1438_s17 + $0x358] sm:$0xff] %v885_v33  ;;  %v889_v42 = vmul.f32 0.16666667, %v761_v36  ;;  %v381_v43 = vadd.f32 3.0, %v253_v21 }
  0xd0   : > { %1014 = vst [vmem:[%s1438_s17 + $0x360] sm:$0xff] %v886_v34  ;;  %1015 = vst [vmem:[%s1438_s17 + $0x368] sm:$0xff] %v887_v35  ;;  %v382_v44 = vadd.f32 3.0, %v254_v26  ;;  %v383_v45 = vadd.f32 3.0, %v255_v27  ;;  %v506_v46 = vmax.f32 %v378_v38, 0.0  ;;  %v507_v47 = vmax.f32 %v379_v39, 0.0 }
  0xd1   : > { %1016 = vst [vmem:[%s1438_s17 + $0x370] sm:$0xff] %v888_v37  ;;  %v508_v48 = vmax.f32 %v380_v40, 0.0  ;;  %v384_v49 = vadd.f32 3.0, %v256_v28  ;;  %1017 = vst [vmem:[%s1438_s17 + $0x378] sm:$0xff] %v889_v42  ;;  %v509_v50 = vmax.f32 %v381_v43, 0.0  ;;  %v385_v53 = vadd.f32 3.0, %v257_v41 }
  0xd2   : > { %v510_v51 = vmax.f32 %v382_v44, 0.0  ;;  %v511_v52 = vmax.f32 %v383_v45, 0.0  ;;  %v634_v54 = vmin.f32 %v506_v46, 6.0  ;;  %v635_v55 = vmin.f32 %v507_v47, 6.0  ;;  %v265_v25 = vld [vmem:[%s1415_s30 + $0x3f8] sm:$0xff] }
  0xd3   : > { %v636_v56 = vmin.f32 %v508_v48, 6.0  ;;  %v512_v57 = vmax.f32 %v384_v49, 0.0  ;;  %v637_v58 = vmin.f32 %v509_v50, 6.0  ;;  %v513_v61 = vmax.f32 %v385_v53, 0.0 }
  0xd4   : > { %v638_v59 = vmin.f32 %v510_v51, 6.0  ;;  %v639_v60 = vmin.f32 %v511_v52, 6.0  ;;  %v762_v63 = vmul.f32 %v634_v54, %v250_v14  ;;  %v763_v0 = vmul.f32 %v635_v55, %v251_v19 }
  0xd5   : > { %v764_v1 = vmul.f32 %v636_v56, %v252_v20  ;;  %v640_v2 = vmin.f32 %v512_v57, 6.0  ;;  %v765_v6 = vmul.f32 %v637_v58, %v253_v21  ;;  %v641_v9 = vmin.f32 %v513_v61, 6.0 }
  0xd6   : > { %v766_v7 = vmul.f32 %v638_v59, %v254_v26  ;;  %v767_v8 = vmul.f32 %v639_v60, %v255_v27  ;;  %v890_v13 = vmul.f32 0.16666667, %v762_v63  ;;  %v891_v14 = vmul.f32 0.16666667, %v763_v0 }
  0xd7   : > { %v892_v15 = vmul.f32 0.16666667, %v764_v1  ;;  %v768_v16 = vmul.f32 %v640_v2, %v256_v28  ;;  %v893_v17 = vmul.f32 0.16666667, %v765_v6  ;;  %v769_v20 = vmul.f32 %v641_v9, %v257_v41 }
  0xd8   : > { %v894_v18 = vmul.f32 0.16666667, %v766_v7  ;;  %v895_v19 = vmul.f32 0.16666667, %v767_v8  ;;  %1018 = vst [vmem:[%s1438_s17 + $0x380] sm:$0xff] %v890_v13  ;;  %1019 = vst [vmem:[%s1438_s17 + $0x388] sm:$0xff] %v891_v14 }
  0xd9   : > { %1020 = vst [vmem:[%s1438_s17 + $0x390] sm:$0xff] %v892_v15  ;;  %v896_v21 = vmul.f32 0.16666667, %v768_v16  ;;  %v386_v22 = vadd.f32 3.0, %v258_v62  ;;  %v387_v23 = vadd.f32 3.0, %v259_v3  ;;  %v388_v24 = vadd.f32 3.0, %v260_v4 }
  0xda   : > { %1021 = vst [vmem:[%s1438_s17 + $0x398] sm:$0xff] %v893_v17  ;;  %1022 = vst [vmem:[%s1438_s17 + $0x3a0] sm:$0xff] %v894_v18  ;;  %v897_v26 = vmul.f32 0.16666667, %v769_v20  ;;  %v389_v27 = vadd.f32 3.0, %v261_v5  ;;  %v390_v28 = vadd.f32 3.0, %v262_v10 }
  0xdb   : > { %1023 = vst [vmem:[%s1438_s17 + $0x3a8] sm:$0xff] %v895_v19  ;;  %v391_v29 = vadd.f32 3.0, %v263_v11  ;;  %1024 = vst [vmem:[%s1438_s17 + $0x3b0] sm:$0xff] %v896_v21  ;;  %v514_v30 = vmax.f32 %v386_v22, 0.0  ;;  %v515_v31 = vmax.f32 %v387_v23, 0.0  ;;  %v516_v32 = vmax.f32 %v388_v24, 0.0 }
  0xdc   : > { %v392_v33 = vadd.f32 3.0, %v264_v12  ;;  %1025 = vst [vmem:[%s1438_s17 + $0x3b8] sm:$0xff] %v897_v26  ;;  %v517_v34 = vmax.f32 %v389_v27, 0.0  ;;  %v518_v35 = vmax.f32 %v390_v28, 0.0  ;;  %v393_v37 = vadd.f32 3.0, %v265_v25 }
  0xdd   : > { %v519_v36 = vmax.f32 %v391_v29, 0.0  ;;  %v642_v38 = vmin.f32 %v514_v30, 6.0  ;;  %v643_v39 = vmin.f32 %v515_v31, 6.0  ;;  %v644_v40 = vmin.f32 %v516_v32, 6.0 }
  0xde   : > { %v520_v41 = vmax.f32 %v392_v33, 0.0  ;;  %v645_v42 = vmin.f32 %v517_v34, 6.0  ;;  %v646_v43 = vmin.f32 %v518_v35, 6.0  ;;  %v521_v45 = vmax.f32 %v393_v37, 0.0 }
  0xdf   : > { %v647_v44 = vmin.f32 %v519_v36, 6.0  ;;  %v770_v46 = vmul.f32 %v642_v38, %v258_v62  ;;  %v771_v47 = vmul.f32 %v643_v39, %v259_v3  ;;  %v772_v48 = vmul.f32 %v644_v40, %v260_v4 }
  0xe0   : > { %v648_v49 = vmin.f32 %v520_v41, 6.0  ;;  %v773_v50 = vmul.f32 %v645_v42, %v261_v5  ;;  %v774_v51 = vmul.f32 %v646_v43, %v262_v10  ;;  %v649_v53 = vmin.f32 %v521_v45, 6.0 }
  0xe1   : > { %v775_v52 = vmul.f32 %v647_v44, %v263_v11  ;;  %v898_v54 = vmul.f32 0.16666667, %v770_v46  ;;  %v899_v55 = vmul.f32 0.16666667, %v771_v47  ;;  %v900_v56 = vmul.f32 0.16666667, %v772_v48 }
  0xe2   : > { %v776_v57 = vmul.f32 %v648_v49, %v264_v12  ;;  %v901_v58 = vmul.f32 0.16666667, %v773_v50  ;;  %v902_v59 = vmul.f32 0.16666667, %v774_v51  ;;  %v777_v61 = vmul.f32 %v649_v53, %v265_v25 }
  0xe3   : > { %v903_v60 = vmul.f32 0.16666667, %v775_v52  ;;  %1026 = vst [vmem:[%s1438_s17 + $0x3c0] sm:$0xff] %v898_v54  ;;  %1027 = vst [vmem:[%s1438_s17 + $0x3c8] sm:$0xff] %v899_v55 }
  0xe4   : > { %1028 = vst [vmem:[%s1438_s17 + $0x3d0] sm:$0xff] %v900_v56  ;;  %v904_v62 = vmul.f32 0.16666667, %v776_v57  ;;  %1029 = vst [vmem:[%s1438_s17 + $0x3d8] sm:$0xff] %v901_v58  ;;  %v905_v63 = vmul.f32 0.16666667, %v777_v61 }
  0xe5   : > { %1030 = vst [vmem:[%s1438_s17 + $0x3e0] sm:$0xff] %v902_v59  ;;  %1031 = vst [vmem:[%s1438_s17 + $0x3e8] sm:$0xff] %v903_v60 }
  0xe6   : > { %1032 = vst [vmem:[%s1438_s17 + $0x3f0] sm:$0xff] %v904_v62  ;;  %1033 = vst [vmem:[%s1438_s17 + $0x3f8] sm:$0xff] %v905_v63 }
  0xe7   : > { %1235 = shalt.err (!%p1232_p1)
}
  0xe8   : > { %s1236_s13 = scalar_lea.hbm %s1681_s29, 16384  ;;  %s1240_s20 = scalar_lea.hbm %s1732_s1, 65536 }
  0xe9   : > { %p1237_p3 = scmp.ne.s32.totalorder %s1681_s29, %s1236_s13  ;;  %p1241_p0 = scmp.lt.u32.totalorder %s1681_s29, %s1732_s1 }
  0xea   : > { %p1242_p2 = scmp.lt.u32.totalorder %s1240_s20, %s1236_s13  ;;  %p1244_p6 = scmp.lt.u32.totalorder %s1236_s13, %s1681_s29 }
  0xeb   : > { %p1238_p4 = pnand %p1237_p3, %p1739_p10 }
  0xec   : > { %p1243_p7 = por %p1242_p2, %p1241_p0 }
  0xed   : > { %p1239_p5 = pneg %p1238_p4 }
  0xee   : > { %p1245_p11 = por %p1244_p6, %p1243_p7 }
  0xf0   : > { %p1246_p12 = pnand %p1245_p11, %p1239_p5 }
  0xf2   : > { %1249 = shalt.err (!%p1246_p12)
}
  0xf3   : > { %s1294_s24 = smov 512   ;;  %s1295_s26 = smov 32  }
  0xf4   : > { %1144 = dma.vmem_to_hbm [thread:$0]  (%p1739_p10), %s1683_s27, 16384, %s1681_s29, %s1035_s2, %s1294_s24, %s1294_s24, %s1295_s26  }
  0xf5 PF: > { %p1155_p8 = scmp.ge.s32.totalorder %s1288_s9, 2  ;;  %s1064_s30 = sand.u32 1, %s1276_s6  }
  0xf6   : > { %p1740_p9 = scmp.ne.s32.totalorder %s1737_s19, 0  ;;  %s1065_s17 = scalar_lea.sflag [#allocation4], %s1064_s30 }
  0xf8   : > { %p1151_p13 = pnand %p1155_p8, %p1740_p9 }
  0xfa   : > { %1271 = dma.done.wait (!%p1151_p13), %s1065_s17, 16384  }
  0xfb   : > { %1273 = vsyncadd (!%p1151_p13), %s1065_s17, 4294950912  ;;  %p14_p1 = scmp.ge.s32.totalorder %s1331_s12, 6   ;;  %s1741_s6 = smov %s1280_s7 }
  0xfc   : > { %s1742_s7 = smov %s1284_s8  ;;  %s1743_s8 = smov %s1343_s15 }
  0xfd   : > { %s1744_s9 = smov %s1331_s12  ;;  %16 = sbr.rel (!%p14_p1) target bundleno = 5 (0x5), region = 69 }
 0x104   :  { %1070 = vsyncpa [#allocation3], 1 }
 0x105   :  { %1072 = vsyncpa [#allocation3 + $0x1], 1 }
 0x106   :  { %1073 = vsyncpa [#allocation4], 1 }
 0x107   :  { %1075 = vsyncpa [#allocation4 + $0x1], 1 }

</bundles_post_ra>
